<compile_context>
chip_gen: v5e
topology: v5e:2x2
jax: 0.10.0
libtpu: 0.0.40
codegen_flags: <defaults>
</compile_context>

<pallas_src>
import functools

import jax
import jax.numpy as jnp
from jax.experimental import pallas as pl
from jax.experimental.pallas import tpu as pltpu


def _attender_kernel(key_ref, val_ref, q_ref, mask_ref, cont_ref, att_ref):
    # key_ref/val_ref: (TB, RAL, CS)  q_ref: (TB, CS)  mask_ref: (TB, RAL)
    # cont_ref: (TB, CS)              att_ref: (TB, RAL)
    q = q_ref[...].astype(jnp.float32)          # (TB, CS)
    m = mask_ref[...].astype(jnp.float32)       # (TB, RAL)

    # energy[b, r] = sum_c key[b, r, c] * query[b, c]
    # Mixed-dtype multiply promotes to f32 (no full-tile f32 copy of key);
    # lane reduce runs on the XLU, overlapping the DMA stream.
    energy = jnp.sum(key_ref[...] * q[:, None, :], axis=-1)     # (TB, RAL) f32

    # Numerically stable softmax over RAL.
    e_max = jnp.max(energy, axis=-1, keepdims=True)
    p = jnp.exp(energy - e_max)
    denom = jnp.sum(p, axis=-1, keepdims=True)
    att = p * pl.reciprocal(denom, approx=False)                # (TB, RAL)

    # Mask applied AFTER softmax, no renormalization (the PyTorch module
    # discards the F.normalize result) -- intentional match.
    att = att * m

    # context[b, c] = sum_r att[b, r] * val[b, r, c]  (sublane reduce on XLU)
    cont = jnp.sum(att[:, :, None] * val_ref[...], axis=1)      # (TB, CS) f32

    cont_ref[...] = cont.astype(cont_ref.dtype)
    att_ref[...] = att.astype(att_ref.dtype)


@functools.lru_cache(maxsize=1)
def _vmem_capacity_bytes():
    """Per-TensorCore VMEM capacity; conservative fallback if query fails."""
    try:
        info = pltpu.get_tpu_info()
        cap = getattr(info, "vmem_capacity_bytes", None)
        if cap:
            return int(cap)
    except Exception:
        pass
    return 64 << 20  # v7x per-TC size: safe lower bound for all generations


def _choose_batch_tile(BS, RAL, CS, key_bytes, val_bytes, out_bytes, budget_bytes):
    """Pick how many batch rows each grid step processes (layout-legal TB)."""
    # Per-batch-row VMEM footprint in bytes:
    #   key/val pipelined input buffers (2 buffers each, *input* dtype)
    kv_inputs = RAL * CS * (key_bytes + val_bytes) * 2
    #   the two (RAL, CS) f32 products (energy and context intermediates)
    f32_temps = RAL * CS * 4 * 2
    #   small arrays: query/mask inputs, cont/att outputs (double buffered)
    #   plus their f32 working copies.
    small = (CS + RAL) * (2 * 4 + 2 * out_bytes + 4)
    per_row = kv_inputs + f32_temps + small

    tb = budget_bytes // max(per_row, 1)
    if tb >= BS:
        # Whole problem fits in one step.  Still force >= 2 blocks for larger
        # batches so the "parallel" axis can shard across v7x's 2 TensorCores.
        if BS >= 16:
            half = -(-BS // 2)                    # ceil(BS / 2)
            return ((half + 7) // 8) * 8          # multiple of 8, < BS for BS >= 16
        return BS
    if tb >= 8:
        return min((tb // 8) * 8, BS)             # sublane-friendly batch tile
    # TODO(synk): per-row working set exceeds budget/8 (very large RAL*CS).
    # The proper fix is a second grid axis over RAL with an online-softmax
    # (flash-style) accumulator; for now use the smallest layout-legal tile
    # and rely on the raised vmem_limit_bytes.
    return min(8, BS)


@jax.jit
def attender(key, val, query, mask):
    """key/val: (BS, RAL, CS), query: (BS, CS), mask: (BS, RAL) any dtype."""
    BS, RAL, CS = key.shape
    out_dtype = jnp.result_type(key.dtype, query.dtype)

    # Generation-aware VMEM plan: leave headroom above the estimate for
    # Mosaic internal scratch, output double buffers and casts.
    capacity = _vmem_capacity_bytes()
    vmem_limit = max(32 << 20, min(int(capacity * 0.85), capacity - (8 << 20)))
    budget = vmem_limit // 2

    TB = _choose_batch_tile(
        BS, RAL, CS,
        key_bytes=key.dtype.itemsize,
        val_bytes=val.dtype.itemsize,
        out_bytes=jnp.dtype(out_dtype).itemsize,
        budget_bytes=budget,
    )
    n_blocks = pl.cdiv(BS, TB)   # last block may be partial: no wrapper-side pad

    grid_spec = pltpu.PrefetchScalarGridSpec(
        num_scalar_prefetch=0,
        grid=(n_blocks,),
        in_specs=[
            pl.BlockSpec((TB, RAL, CS), lambda b: (b, 0, 0)),  # key
            pl.BlockSpec((TB, RAL, CS), lambda b: (b, 0, 0)),  # val
            pl.BlockSpec((TB, CS), lambda b: (b, 0)),          # query
            pl.BlockSpec((TB, RAL), lambda b: (b, 0)),         # mask (cast in-kernel)
        ],
        out_specs=[
            pl.BlockSpec((TB, CS), lambda b: (b, 0)),          # context
            pl.BlockSpec((TB, RAL), lambda b: (b, 0)),         # attention
        ],
    )

    cont, att = pl.pallas_call(
        _attender_kernel,
        grid_spec=grid_spec,
        out_shape=(
            jax.ShapeDtypeStruct((BS, CS), out_dtype),
            jax.ShapeDtypeStruct((BS, RAL), out_dtype),
        ),
        compiler_params=pltpu.CompilerParams(
            dimension_semantics=("parallel",),   # megacore-shard batch blocks
            vmem_limit_bytes=vmem_limit,
        ),
    )(key, val, query, mask)

    return cont, att


def _attender_ref(key, val, query, mask):
    energy = jnp.einsum("brc,bc->br", key, query)
    att = jax.nn.softmax(energy, axis=1) * mask.astype(jnp.float32)
    cont = jnp.einsum("br,brc->bc", att, val)
    return cont, att


if __name__ == "__main__":
    # Small shapes implied by the module: BS=2, RAL=8 (listener steps), CS=32.
    BS, RAL, CS = 2, 8, 32
    k0, k1, k2 = jax.random.split(jax.random.PRNGKey(0), 3)

    key = jax.random.normal(k0, (BS, RAL, CS), dtype=jnp.float32)
    val = jax.random.normal(k1, (BS, RAL, CS), dtype=jnp.float32)
    query = jax.random.normal(k2, (BS, CS), dtype=jnp.float32)
    # mask of "true lengths": first sequence uses 6 steps, second uses 8.
    lens = jnp.array([6, 8], dtype=jnp.int32)
    mask = (jnp.arange(RAL)[None, :] < lens[:, None]).astype(jnp.float32)

    cont, att = attender(key, val, query, mask)
    cont = jax.block_until_ready(cont)
    att = jax.block_until_ready(att)

    cont_ref, att_ref = _attender_ref(key, val, query, mask)
    assert jnp.allclose(cont, cont_ref, atol=1e-5, rtol=1e-5)
    assert jnp.allclose(att, att_ref, atol=1e-5, rtol=1e-5)

    print("KERNEL_OK")
</pallas_src>

<mosaic_0001>
module attributes {stable_mosaic.version = 11 : i64} {
  func.func @_attender_kernel(%arg0: i32, %arg1: memref<2x8x32xf32, #tpu.memory_space<vmem>>, %arg2: memref<2x8x32xf32, #tpu.memory_space<vmem>>, %arg3: memref<2x32xf32, #tpu.memory_space<vmem>>, %arg4: memref<2x8xf32, #tpu.memory_space<vmem>>, %arg5: memref<2x32xf32, #tpu.memory_space<vmem>>, %arg6: memref<2x8xf32, #tpu.memory_space<vmem>>) attributes {dimension_semantics = [#tpu.dimension_semantics<parallel>], iteration_bounds = array<i64: 1>, scalar_prefetch = 0 : i64, scratch_operands = 0 : i64, tpu.core_type = #tpu.core_type<tc>, window_params = [{transform_indices = @transform_0, window_bounds = array<i64: 2, 8, 32>}, {transform_indices = @transform_1, window_bounds = array<i64: 2, 8, 32>}, {transform_indices = @transform_2, window_bounds = array<i64: 2, 32>}, {transform_indices = @transform_3, window_bounds = array<i64: 2, 8>}, {transform_indices = @transform_4, window_bounds = array<i64: 2, 32>}, {transform_indices = @transform_5, window_bounds = array<i64: 2, 8>}]} {
    %c0 = arith.constant 0 : index
    %c0_0 = arith.constant 0 : index
    %0 = vector.load %arg3[%c0, %c0_0] : memref<2x32xf32, #tpu.memory_space<vmem>>, vector<2x32xf32>
    %c0_1 = arith.constant 0 : index
    %c0_2 = arith.constant 0 : index
    %1 = vector.load %arg4[%c0_1, %c0_2] : memref<2x8xf32, #tpu.memory_space<vmem>>, vector<2x8xf32>
    %c0_3 = arith.constant 0 : index
    %c0_4 = arith.constant 0 : index
    %c0_5 = arith.constant 0 : index
    %2 = vector.load %arg1[%c0_3, %c0_4, %c0_5] : memref<2x8x32xf32, #tpu.memory_space<vmem>>, vector<2x8x32xf32>
    %3 = vector.shape_cast %0 : vector<2x32xf32> to vector<2x1x32xf32>
    %4 = vector.broadcast %3 : vector<2x1x32xf32> to vector<2x8x32xf32>
    %5 = arith.mulf %2, %4 : vector<2x8x32xf32>
    %cst = arith.constant dense<0.000000e+00> : vector<2x8xf32>
    %6 = vector.multi_reduction <add>, %5, %cst [2] : vector<2x8x32xf32> to vector<2x8xf32>
    %cst_6 = arith.constant dense<0xFF800000> : vector<2xf32>
    %7 = vector.multi_reduction <maximumf>, %6, %cst_6 [1] : vector<2x8xf32> to vector<2xf32>
    %8 = vector.shape_cast %7 : vector<2xf32> to vector<2x1xf32>
    %9 = vector.broadcast %8 : vector<2x1xf32> to vector<2x8xf32>
    %10 = arith.subf %6, %9 : vector<2x8xf32>
    %11 = math.exp %10 : vector<2x8xf32>
    %cst_7 = arith.constant dense<0.000000e+00> : vector<2xf32>
    %12 = vector.multi_reduction <add>, %11, %cst_7 [1] : vector<2x8xf32> to vector<2xf32>
    %13 = vector.shape_cast %12 : vector<2xf32> to vector<2x1xf32>
    %14 = tpu.reciprocal %13 : vector<2x1xf32> -> vector<2x1xf32>
    %15 = vector.broadcast %14 : vector<2x1xf32> to vector<2x8xf32>
    %16 = arith.mulf %11, %15 : vector<2x8xf32>
    %17 = arith.mulf %16, %1 : vector<2x8xf32>
    %18 = vector.shape_cast %17 : vector<2x8xf32> to vector<2x8x1xf32>
    %c0_8 = arith.constant 0 : index
    %c0_9 = arith.constant 0 : index
    %c0_10 = arith.constant 0 : index
    %19 = vector.load %arg2[%c0_8, %c0_9, %c0_10] : memref<2x8x32xf32, #tpu.memory_space<vmem>>, vector<2x8x32xf32>
    %20 = vector.broadcast %18 : vector<2x8x1xf32> to vector<2x8x32xf32>
    %21 = arith.mulf %20, %19 : vector<2x8x32xf32>
    %cst_11 = arith.constant dense<0.000000e+00> : vector<2x32xf32>
    %22 = vector.multi_reduction <add>, %21, %cst_11 [1] : vector<2x8x32xf32> to vector<2x32xf32>
    %c0_12 = arith.constant 0 : index
    %c0_13 = arith.constant 0 : index
    %23 = vector.load %arg5[%c0_12, %c0_13] : memref<2x32xf32, #tpu.memory_space<vmem>>, vector<2x32xf32>
    tpu.vector_store %arg5[%c0_12, %c0_13], %22 {strides = array<i32>} : memref<2x32xf32, #tpu.memory_space<vmem>>, vector<2x32xf32>,
    %c0_14 = arith.constant 0 : index
    %c0_15 = arith.constant 0 : index
    %24 = vector.load %arg6[%c0_14, %c0_15] : memref<2x8xf32, #tpu.memory_space<vmem>>, vector<2x8xf32>
    tpu.vector_store %arg6[%c0_14, %c0_15], %17 {strides = array<i32>} : memref<2x8xf32, #tpu.memory_space<vmem>>, vector<2x8xf32>,
    return
  }
  func.func @transform_0(%arg0: i32) -> (i32, i32, i32) {
    %c0_i32 = arith.constant 0 : i32
    %c0_i32_0 = arith.constant 0 : i32
    %c0_i32_1 = arith.constant 0 : i32
    return %arg0, %c0_i32, %c0_i32_0 : i32, i32, i32
  }
  func.func @transform_1(%arg0: i32) -> (i32, i32, i32) {
    %c0_i32 = arith.constant 0 : i32
    %c0_i32_0 = arith.constant 0 : i32
    %c0_i32_1 = arith.constant 0 : i32
    return %arg0, %c0_i32, %c0_i32_0 : i32, i32, i32
  }
  func.func @transform_2(%arg0: i32) -> (i32, i32) {
    %c0_i32 = arith.constant 0 : i32
    %c0_i32_0 = arith.constant 0 : i32
    return %arg0, %c0_i32 : i32, i32
  }
  func.func @transform_3(%arg0: i32) -> (i32, i32) {
    %c0_i32 = arith.constant 0 : i32
    %c0_i32_0 = arith.constant 0 : i32
    return %arg0, %c0_i32 : i32, i32
  }
  func.func @transform_4(%arg0: i32) -> (i32, i32) {
    %c0_i32 = arith.constant 0 : i32
    %c0_i32_0 = arith.constant 0 : i32
    return %arg0, %c0_i32 : i32, i32
  }
  func.func @transform_5(%arg0: i32) -> (i32, i32) {
    %c0_i32 = arith.constant 0 : i32
    %c0_i32_0 = arith.constant 0 : i32
    return %arg0, %c0_i32 : i32, i32
  }
}

</mosaic_0001>

<bundles_post_ra>
// kernel: attender.1
= control target key start
LH: loop header
LB: loop body
LE: loop exit
PB: predicated region body
PF: predicated region fallthrough
CT: control target
= control target key end

     0   :  { %11 = vsyncpa [#allocation3], 0  ;;  %s460_s0 = inlined_call_operand.hbm [shape: f32[2,8,32], index: 0, kind: input, shape index: {}]   ;;  %s461_s1 = inlined_call_operand.hbm [shape: f32[2,8,32], index: 1, kind: input, shape index: {}]   ;;  %s462_s2 = inlined_call_operand.hbm [shape: f32[2,32], index: 2, kind: input, shape index: {}]   ;;  %s463_s3 = inlined_call_operand.vmem [shape: f32[2,8], index: 3, kind: input, shape index: {}]   ;;  %s464_s4 = inlined_call_operand.hbm [shape: f32[2,32], index: 4, kind: output, shape index: {0}]   ;;  %s465_s5 = inlined_call_operand.hbm [shape: f32[2,8], index: 5, kind: output, shape index: {1}]  }
   0x1   :  { %12 = vsyncpa [#allocation6], 0 }
   0x2   :  { %13 = vsyncpa [#allocation4], 0 }
   0x3   :  { %14 = vsyncpa [#allocation10], 0  ;;  %s32_s20 = sshll.u32 %s461_s1, 4  ;;  %s385_s21 = smov [#allocation5]   ;;  %s33_s20 = int_to_ptr.hbm [resolvable:$true] %s32_s20 }
   0x4   :  { %s34_s22 = sshll.u32 %s385_s21, 4  ;;  %s19_s25 = sshll.u32 %s460_s0, 4  ;;  %s35_s22 = int_to_ptr.vmem [resolvable:$true] %s34_s22  ;;  %s20_s25 = int_to_ptr.hbm [resolvable:$true] %s19_s25 }
   0x5   :  { %s386_s26 = smov 128   ;;  %s387_s27 = smov 8  }
   0x6   :  { %40 = dma.hbm_to_vmem [thread:$0]  %s33_s20, 256, %s35_s22, [#allocation6], %s386_s26, %s386_s26, %s387_s27  }
   0x7   :  { %s388_s28 = smov [#allocation2]   ;;  %s46_s7 = sshll.u32 %s462_s2, 4  ;;  %s47_s7 = int_to_ptr.hbm [resolvable:$true] %s46_s7 }
   0x8   :  { %s21_s29 = sshll.u32 %s388_s28, 4  ;;  %s389_s1 = smov [#allocation7]   ;;  %s22_s29 = int_to_ptr.vmem [resolvable:$true] %s21_s29 }
   0x9   :  { %27 = dma.hbm_to_vmem [thread:$0]  %s20_s25, 256, %s22_s29, [#allocation3], %s386_s26, %s386_s26, %s387_s27  }
   0xa   :  { %s48_s8 = sshll.u32 %s389_s1, 4  ;;  %s49_s8 = int_to_ptr.vmem [resolvable:$true] %s48_s8 }
   0xb   :  { %51 = dma.hbm_to_vmem [thread:$0]  %s47_s7, 32, %s49_s8, [#allocation6]  }
   0xc   :  { %377 = dma.done.wait [#allocation3], 256  }
   0xd   :  { %378 = vsyncadd [#allocation3], 4294967040 }
   0xe   :  { %379 = dma.done.wait [#allocation6], 288  }
   0xf   :  { %380 = vsyncadd [#allocation6], 4294967008  ;;  %v66_v0 = vld [vmem:[#allocation7] sm:$0x3]  ;;  %vm78_vm0 = vcmask 261120   ;;  %v69_v6 = vld [vmem:[#allocation2 + $0x8] sm:$0xff]  ;;  %v87_v11 = vlaneseq }
  0x10   :  { %v68_v1 = vld [vmem:[#allocation2] sm:$0xff]  ;;  %v72_v2 = vperm.slane %v66_v0, 0  ;;  %v71_v3 = vrot.slane %v66_v0, 1  ;;  %vm91_vm1 = vcmask 1041409   ;;  %vm94_vm2 = vcmask 58368   ;;  %v164_v57 = vld [vmem:[#allocation5] sm:$0xff] }
  0x11   :  { %v434_v12 = vand.u32 127, %v87_v11  ;;  %v390_v18 = vmov 0   ;;  %v148_v28 = vshrl.u32 %v87_v11, 7  ;;  %v67_v29 = vld [vmem:[%s463_s3] sm:$0x3]  ;;  %v165_v63 = vld [vmem:[#allocation5 + $0x8] sm:$0xff] }
  0x12   :  { %v76_v4 = vmul.f32 %v72_v2, %v68_v1  ;;  %v73_v5 = vperm.slane %v71_v3, 0  ;;  %246 = vset.pattern.permute.xlu2 %v390_v18  ;;  %245 = vset.pattern.permute.xlu1 %v390_v18  ;;  %v146_v30 = vperm.slane %v67_v29, 0  ;;  %v153_v31 = vperm.slane %v67_v29, 1  ;;  %s391_s3 = smov [#allocation9]   ;;  %s221_s12 = sshll.u32 %s465_s5, 4  ;;  %s222_s12 = int_to_ptr.hbm [resolvable:$true] %s221_s12 }
  0x13   :  { %247 = vset.pattern.permute.xlu0 %v148_v28  ;;  %s219_s9 = sshll.u32 %s391_s3, 4  ;;  %s392_s5 = smov [#allocation8]   ;;  %vm196_vm7 = vcmask 254976   ;;  %s220_s9 = int_to_ptr.vmem [resolvable:$true] %s219_s9 }
  0x14   :  { %v79_v7 = vsel %vm78_vm0, %v76_v4, 0.0  ;;  %v77_v8 = vmul.f32 %v73_v5, %v69_v6  ;;  %s208_s13 = sshll.u32 %s392_s5, 4  ;;  %s210_s16 = sshll.u32 %s464_s4, 4  ;;  %s209_s13 = int_to_ptr.vmem [resolvable:$true] %s208_s13  ;;  %s211_s16 = int_to_ptr.hbm [resolvable:$true] %s210_s16 }
  0x15   :  { %80 = vadd.xlane.f32.xlu0 %v79_v7 }
  0x16   :  { %v82_v9 = vsel %vm78_vm0, %v77_v8, 0.0 }
  0x1d   :  { %83 = vadd.xlane.f32.xlu0 %v82_v9 }
  0x31   :  { %151 = vperm.xlu0 %247, %v146_v30  }
  0x39   :  { %250 = vset.pattern.permute.xlu0 %v390_v18 }
  0x88   :  { %v81_v10 = vpop.xlane.xlu0 %80 }
  0x89   :  { %v89_v14 = vperm.slane %v81_v10, %v434_v12 }
  0x90   :  { %v84_v13 = vpop.xlane.xlu0 %83 }
  0x91   :  { %v90_v15 = vperm.slane %v84_v13, %v434_v12 }
  0x93   :  { %v92_v16 = vsel %vm91_vm1, %v90_v15, %v89_v14 }
  0x94   :  { %v95_v17 = vsel %vm94_vm2, %v92_v16, -inf }
  0x95   :  { %96 = vmax.xlane.f32.xlu1 %v95_v17 }
  0xa3   :  { %v152_v50 = vpop.permute.xlu0 %151 }
 0x108   :  { %v97_v19 = vpop.xlane.xlu1 %96 }
 0x109   :  { %v99_v20 = vperm.slane %v97_v19, 0  ;;  %v100_v21 = vperm.slane %v97_v19, 1 }
 0x10b   :  { %v103_v22 = vsub.f32 %v81_v10, %v99_v20  ;;  %v104_v23 = vsub.f32 %v84_v13, %v100_v21 }
 0x10d   :  { %v105_v24 = vmul.f32 1.442695, %v103_v22  ;;  %v107_v25 = vmul.f32 1.442695, %v104_v23 }
 0x10f   :  { %251 = vpow2.f32 %v105_v24 }
 0x110   :  { %253 = vpow2.f32 %v107_v25 }
 0x115   :  { %v252_v26 = vpop.eup %251 }
 0x116   :  { %v254_v27 = vpop.eup %253  ;;  %112 = vperm.xlu1 %245, %v252_v26  }
 0x117   :  { %115 = vperm.xlu2 %246, %v254_v27  }
 0x11e   :  { %248 = vset.pattern.permute.xlu1 %v148_v28 }
 0x126   :  { %158 = vperm.xlu1 %248, %v153_v31  }
 0x12e   :  { %249 = vset.pattern.permute.xlu1 %v390_v18 }
 0x171   :  { %v116_v32 = vpop.permute.xlu2 %115 }
 0x172   :  { %v118_v34 = vperm.slane %v116_v32, %v434_v12 }
 0x188   :  { %v113_v33 = vpop.permute.xlu1 %112 }
 0x189   :  { %v117_v35 = vperm.slane %v113_v33, %v434_v12 }
 0x18b   :  { %v119_v36 = vsel %vm91_vm1, %v118_v34, %v117_v35 }
 0x18c   :  { %v121_v37 = vsel %vm94_vm2, %v119_v36, 0.0 }
 0x18d   :  { %122 = vadd.xlane.f32.xlu2 %v121_v37 }
 0x198   :  { %v159_v55 = vpop.permute.xlu1 %158 }
 0x200   :  { %v123_v38 = vpop.xlane.xlu2 %122 }
 0x201   :  { %255 = vrcp.f32 %v123_v38  ;;  %v135_v42 = vand.u32 2147483648, %v123_v38  ;;  %v133_v44 = vand.u32 2147483647, %v123_v38  ;;  %vm129_vm4 = vweird.f32 %v123_v38 }
 0x203   :  { %v136_v46 = vor.u32 1.1754944e-38, %v135_v42  ;;  %vm134_vm6 = vcmp.eq.f32.partialorder %v133_v44, 8.507059e+37 }
 0x207   :  { %v256_v39 = vpop.eup %255 }
 0x208   :  { %v125_v40 = vmul.f32 %v256_v39, %v123_v38  ;;  %vm130_vm3 = vweird.f32 %v256_v39 }
 0x209   :  { %vm131_vm5 = vmor %vm129_vm4, %vm130_vm3 }
 0x20a   :  { %v126_v41 = vsub.f32 1.0, %v125_v40 }
 0x20c   :  { %v127_v43 = vmul.f32 %v256_v39, %v126_v41 }
 0x20e   :  { %v128_v45 = vadd.f32 %v256_v39, %v127_v43 }
 0x210   :  { %v132_v47 = vsel %vm131_vm5, %v256_v39, %v128_v45 }
 0x211   :  { %v137_v48 = vsel %vm134_vm6, %v136_v46, %v132_v47 }
 0x212   :  { %v139_v49 = vperm.slane %v137_v48, 0  ;;  %v140_v52 = vperm.slane %v137_v48, 1 }
 0x214   :  { %v143_v51 = vmul.f32 %v252_v26, %v139_v49  ;;  %v144_v54 = vmul.f32 %v254_v27, %v140_v52 }
 0x216   :  { %v162_v53 = vmul.f32 %v152_v50, %v143_v51  ;;  %v163_v56 = vmul.f32 %v159_v55, %v144_v54 }
 0x218   :  { %168 = vperm.xlu1 %249, %v162_v53  }
 0x220   :  { %173 = vperm.xlu1 %249, %v163_v56  }
 0x28a   :  { %v169_v58 = vpop.permute.xlu1 %168 }
 0x28b   :  { %v176_v59 = vmul.f32 %v169_v58, %v164_v57  ;;  %v198_v1 = vperm.slane %v169_v58, %v434_v12 }
 0x28d   :  { %v178_v60 = vsel %vm78_vm0, %v176_v59, 0.0 }
 0x28e   :  { %v179_v61 = vrot.slane %v178_v60, 4 }
 0x290   :  { %v180_v62 = vadd.f32 %v179_v61, %v178_v60 }
 0x292   :  { %v174_v0 = vpop.permute.xlu1 %173  ;;  %v181_v4 = vrot.slane %v180_v62, 2 }
 0x293   :  { %v177_v2 = vmul.f32 %v174_v0, %v165_v63  ;;  %v199_v3 = vperm.slane %v174_v0, %v434_v12 }
 0x294   :  { %v182_v8 = vadd.f32 %v181_v4, %v180_v62 }
 0x295   :  { %v185_v5 = vsel %vm78_vm0, %v177_v2, 0.0  ;;  %v200_v6 = vsel %vm91_vm1, %v199_v3, %v198_v1 }
 0x296   :  { %v186_v7 = vrot.slane %v185_v5, 4  ;;  %202 = vst.msk [vmem:[#allocation9] sm:$0x3] %vm94_vm2, %v200_v6  ;;  %v183_v11 = vrot.slane %v182_v8, 1 }
 0x297   :  { %224 = dma.vmem_to_hbm [thread:$0]  %s220_s9, 32, %s222_s12, [#allocation10]  }
 0x298   :  { %v187_v9 = vadd.f32 %v186_v7, %v185_v5  ;;  %v184_v12 = vadd.f32 %v183_v11, %v182_v8 }
 0x29a   :  { %v188_v10 = vrot.slane %v187_v9, 2 }
 0x29c   :  { %v189_v13 = vadd.f32 %v188_v10, %v187_v9 }
 0x29e   :  { %v190_v14 = vrot.slane %v189_v13, 1 }
 0x2a0   :  { %v191_v15 = vadd.f32 %v190_v14, %v189_v13 }
 0x2a2   :  { %v194_v16 = vsel %vm91_vm1, %v191_v15, %v184_v12 }
 0x2a3   :  { %197 = vst.msk [vmem:[#allocation8] sm:$0x3] %vm196_vm7, %v194_v16 }
 0x2a4   :  { %213 = dma.vmem_to_hbm [thread:$0]  %s209_s13, 32, %s211_s16, [#allocation4]  }
 0x2a5   :  { %381 = dma.done.wait [#allocation4], 32  }
 0x2a6   :  { %382 = vsyncadd [#allocation4], 4294967264 }
 0x2a7   :  { %383 = dma.done.wait [#allocation10], 32  }
 0x2a8   :  { %384 = vsyncadd [#allocation10], 4294967264 }
 0x2a9   :  { %233 = vsyncpa [#allocation3], 1 }
 0x2aa   :  { %234 = vsyncpa [#allocation6], 1 }
 0x2ab   :  { %235 = vsyncpa [#allocation4], 1 }
 0x2ac   :  { %236 = vsyncpa [#allocation10], 1 }

</bundles_post_ra>
